<compile_context>
chip_gen: v7x
topology: tpu7x:2x2x1
jax: 0.10.0
libtpu: 0.0.40
codegen_flags: <defaults>
</compile_context>

<pallas_src>
import jax
import jax.numpy as jnp
from jax import lax
from jax.experimental import pallas as pl
from jax.experimental.pallas import tpu as pltpu

EPS = 1e-5
LANE = 128
SUBLANE_BF16 = 16


def _round_up(n, m):
    return ((n + m - 1) // m) * m


# ----------------------------------------------------------------------------
# Kernel: one batch tile through the whole (BN-folded) MLP.
# ----------------------------------------------------------------------------
def regretnet_kernel(x_ref, w1_ref, b1_ref, w2_ref, b2_ref, w3_ref, b3_ref,
                     o_ref):
    # x: (tb, K_pad) bf16; weights bf16; biases f32 (BN already folded in).
    h = jnp.dot(x_ref[...], w1_ref[...], preferred_element_type=jnp.float32)
    h = jnp.maximum(h + b1_ref[...], 0.0)
    # Dropout(0.2): identity in eval mode.
    # TODO(synk): training-mode dropout (pltpu.prng_random_bits mask) not emitted.
    h = jnp.dot(h.astype(jnp.bfloat16), w2_ref[...],
                preferred_element_type=jnp.float32)
    h = jnp.maximum(h + b2_ref[...], 0.0)
    out = jnp.dot(h.astype(jnp.bfloat16), w3_ref[...],
                  preferred_element_type=jnp.float32)
    o_ref[...] = (out + b3_ref[...]).astype(o_ref.dtype)


# ----------------------------------------------------------------------------
# Wrapper-side parameter prep: fold BN, pad to MXU-friendly shapes, cast bf16.
# ----------------------------------------------------------------------------
def prepare_params(p):
    s1 = p["g1"] * lax.rsqrt(p["v1"] + EPS)               # (1, 512)
    w1 = p["w1"] * s1                                      # (in, 512)
    b1 = (p["b1"] - p["m1"]) * s1 + p["be1"]
    s2 = p["g2"] * lax.rsqrt(p["v2"] + EPS)                # (1, 256)
    w2 = p["w2"] * s2                                      # (512, 256)
    b2 = (p["b2"] - p["m2"]) * s2 + p["be2"]
    w3, b3 = p["w3"], p["b3"]

    in_size = w1.shape[0]
    num_actions = w3.shape[1]
    k_pad = _round_up(in_size, LANE)                       # full-width first matmul
    a_pad = _round_up(num_actions, LANE)                   # lane-dense output

    w1 = jnp.pad(w1, ((0, k_pad - in_size), (0, 0)))
    w3 = jnp.pad(w3, ((0, 0), (0, a_pad - num_actions)))
    b3 = jnp.pad(b3, ((0, 0), (0, a_pad - num_actions)))

    return {
        "w1": w1.astype(jnp.bfloat16), "b1": b1.astype(jnp.float32),
        "w2": w2.astype(jnp.bfloat16), "b2": b2.astype(jnp.float32),
        "w3": w3.astype(jnp.bfloat16), "b3": b3.astype(jnp.float32),
        "in_size": in_size, "num_actions": num_actions,
        "k_pad": k_pad, "a_pad": a_pad,
    }


def regretnet_forward(x, prep, *, batch_block=512):
    B, in_size = x.shape
    assert in_size == prep["in_size"]
    k_pad, a_pad = prep["k_pad"], prep["a_pad"]
    num_actions = prep["num_actions"]

    # Batch tile: multiple of 16 (bf16 sublane packing), capped at batch_block.
    tb = _round_up(min(batch_block, _round_up(B, SUBLANE_BF16)), SUBLANE_BF16)
    b_pad = _round_up(B, tb)

    xp = jnp.pad(x.astype(jnp.bfloat16),
                 ((0, b_pad - B), (0, k_pad - in_size)))

    rowtile = lambda i: (i, 0)     # activations: tile over the batch axis
    const = lambda i: (0, 0)       # resident weights / biases

    out = pl.pallas_call(
        regretnet_kernel,
        out_shape=jax.ShapeDtypeStruct((b_pad, a_pad), jnp.float32),
        grid_spec=pltpu.PrefetchScalarGridSpec(
            num_scalar_prefetch=0,
            grid=(b_pad // tb,),
            in_specs=[
                pl.BlockSpec((tb, k_pad), rowtile),        # x tile
                pl.BlockSpec(prep["w1"].shape, const),     # W1' (K_pad, 512)
                pl.BlockSpec(prep["b1"].shape, const),     # b1' (1, 512)
                pl.BlockSpec(prep["w2"].shape, const),     # W2' (512, 256)
                pl.BlockSpec(prep["b2"].shape, const),     # b2' (1, 256)
                pl.BlockSpec(prep["w3"].shape, const),     # W3  (256, A_pad)
                pl.BlockSpec(prep["b3"].shape, const),     # b3  (1, A_pad)
            ],
            out_specs=pl.BlockSpec((tb, a_pad), rowtile),
        ),
        compiler_params=pltpu.CompilerParams(
            dimension_semantics=("parallel",),
            vmem_limit_bytes=32 * 1024 * 1024,
        ),
    )(xp, prep["w1"], prep["b1"], prep["w2"], prep["b2"],
      prep["w3"], prep["b3"])

    return out[:B, :num_actions]


# ----------------------------------------------------------------------------
# Init + pure-JAX reference (f32, unfolded) for the correctness check.
# ----------------------------------------------------------------------------
def init_params(key, input_size, num_actions):
    """Matches RegretNet.__init__: kaiming_normal_(fan_in, relu) weights stored
    pre-transposed as (in, out); PyTorch-default uniform biases; BN identity
    running stats (eval mode)."""
    ks = jax.random.split(key, 6)

    def kaiming(k, fan_in, fan_out):
        std = (2.0 / fan_in) ** 0.5
        return jax.random.normal(k, (fan_in, fan_out), jnp.float32) * std

    def bias(k, fan_in, fan_out):
        bound = 1.0 / (fan_in ** 0.5)
        return jax.random.uniform(k, (1, fan_out), jnp.float32, -bound, bound)

    return {
        "w1": kaiming(ks[0], input_size, 512), "b1": bias(ks[1], input_size, 512),
        "g1": jnp.ones((1, 512), jnp.float32), "be1": jnp.zeros((1, 512), jnp.float32),
        "m1": jnp.zeros((1, 512), jnp.float32), "v1": jnp.ones((1, 512), jnp.float32),
        "w2": kaiming(ks[2], 512, 256), "b2": bias(ks[3], 512, 256),
        "g2": jnp.ones((1, 256), jnp.float32), "be2": jnp.zeros((1, 256), jnp.float32),
        "m2": jnp.zeros((1, 256), jnp.float32), "v2": jnp.ones((1, 256), jnp.float32),
        "w3": kaiming(ks[4], 256, num_actions), "b3": bias(ks[5], 256, num_actions),
    }


def reference_forward(x, p):
    h = x @ p["w1"] + p["b1"]
    h = (h - p["m1"]) / jnp.sqrt(p["v1"] + EPS) * p["g1"] + p["be1"]
    h = jnp.maximum(h, 0.0)
    h = h @ p["w2"] + p["b2"]
    h = (h - p["m2"]) / jnp.sqrt(p["v2"] + EPS) * p["g2"] + p["be2"]
    h = jnp.maximum(h, 0.0)
    return h @ p["w3"] + p["b3"]


if __name__ == "__main__":
    key = jax.random.PRNGKey(0)
    k_params, k_x = jax.random.split(key)

    batch, input_size, num_actions = 8, 32, 8
    params = init_params(k_params, input_size, num_actions)
    x = jax.random.normal(k_x, (batch, input_size), jnp.float32)

    prep = prepare_params(params)
    out = regretnet_forward(x, prep)
    out = jax.block_until_ready(out)

    ref = reference_forward(x, params)
    assert out.shape == (batch, num_actions)
    # bf16 matmul operands vs f32 reference -> ~1e-2 relative tolerance.
    assert jnp.allclose(out, ref, atol=5e-2, rtol=5e-2), (
        float(jnp.max(jnp.abs(out - ref))))

    print("KERNEL_OK")
</pallas_src>

<mosaic_0001>
module attributes {stable_mosaic.version = 11 : i64} {
  func.func @regretnet_kernel(%arg0: i32, %arg1: memref<16x128xbf16, #tpu.memory_space<vmem>>, %arg2: memref<128x512xbf16, #tpu.memory_space<vmem>>, %arg3: memref<1x512xf32, #tpu.memory_space<vmem>>, %arg4: memref<512x256xbf16, #tpu.memory_space<vmem>>, %arg5: memref<1x256xf32, #tpu.memory_space<vmem>>, %arg6: memref<256x128xbf16, #tpu.memory_space<vmem>>, %arg7: memref<1x128xf32, #tpu.memory_space<vmem>>, %arg8: memref<16x128xf32, #tpu.memory_space<vmem>>) attributes {dimension_semantics = [#tpu.dimension_semantics<parallel>], iteration_bounds = array<i64: 1>, scalar_prefetch = 0 : i64, scratch_operands = 0 : i64, tpu.core_type = #tpu.core_type<tc>, window_params = [{transform_indices = @transform_0, window_bounds = array<i64: 16, 128>}, {pipeline_mode = #tpu.pipeline_mode<synchronous>, transform_indices = @transform_1, window_bounds = array<i64: 128, 512>}, {pipeline_mode = #tpu.pipeline_mode<synchronous>, transform_indices = @transform_2, window_bounds = array<i64: 1, 512>}, {pipeline_mode = #tpu.pipeline_mode<synchronous>, transform_indices = @transform_3, window_bounds = array<i64: 512, 256>}, {pipeline_mode = #tpu.pipeline_mode<synchronous>, transform_indices = @transform_4, window_bounds = array<i64: 1, 256>}, {pipeline_mode = #tpu.pipeline_mode<synchronous>, transform_indices = @transform_5, window_bounds = array<i64: 256, 128>}, {pipeline_mode = #tpu.pipeline_mode<synchronous>, transform_indices = @transform_6, window_bounds = array<i64: 1, 128>}, {transform_indices = @transform_7, window_bounds = array<i64: 16, 128>}]} {
    %c0 = arith.constant 0 : index
    %c0_0 = arith.constant 0 : index
    %0 = vector.load %arg1[%c0, %c0_0] : memref<16x128xbf16, #tpu.memory_space<vmem>>, vector<16x128xbf16>
    %c0_1 = arith.constant 0 : index
    %c0_2 = arith.constant 0 : index
    %1 = vector.load %arg2[%c0_1, %c0_2] : memref<128x512xbf16, #tpu.memory_space<vmem>>, vector<128x512xbf16>
    %cst = arith.constant dense<0.000000e+00> : vector<16x512xf32>
    %2 = tpu.matmul %0, %1, %cst {dimension_numbers = #tpu.dot_dimension_numbers<[1], [0], [0], [1], [0, 0, 1, 1], [], []>} : vector<16x128xbf16>, vector<128x512xbf16>, vector<16x512xf32> -> vector<16x512xf32>
    %c0_3 = arith.constant 0 : index
    %c0_4 = arith.constant 0 : index
    %3 = vector.load %arg3[%c0_3, %c0_4] : memref<1x512xf32, #tpu.memory_space<vmem>>, vector<1x512xf32>
    %4 = vector.broadcast %3 : vector<1x512xf32> to vector<16x512xf32>
    %5 = arith.addf %2, %4 : vector<16x512xf32>
    %cst_5 = arith.constant 0.000000e+00 : f32
    %6 = vector.broadcast %cst_5 : f32 to vector<16x512xf32>
    %7 = arith.maximumf %5, %6 : vector<16x512xf32>
    %8 = arith.truncf %7 : vector<16x512xf32> to vector<16x512xbf16>
    %c0_6 = arith.constant 0 : index
    %c0_7 = arith.constant 0 : index
    %9 = vector.load %arg4[%c0_6, %c0_7] : memref<512x256xbf16, #tpu.memory_space<vmem>>, vector<512x256xbf16>
    %cst_8 = arith.constant dense<0.000000e+00> : vector<16x256xf32>
    %10 = tpu.matmul %8, %9, %cst_8 {dimension_numbers = #tpu.dot_dimension_numbers<[1], [0], [0], [1], [0, 0, 1, 1], [], []>} : vector<16x512xbf16>, vector<512x256xbf16>, vector<16x256xf32> -> vector<16x256xf32>
    %c0_9 = arith.constant 0 : index
    %c0_10 = arith.constant 0 : index
    %11 = vector.load %arg5[%c0_9, %c0_10] : memref<1x256xf32, #tpu.memory_space<vmem>>, vector<1x256xf32>
    %12 = vector.broadcast %11 : vector<1x256xf32> to vector<16x256xf32>
    %13 = arith.addf %10, %12 : vector<16x256xf32>
    %cst_11 = arith.constant 0.000000e+00 : f32
    %14 = vector.broadcast %cst_11 : f32 to vector<16x256xf32>
    %15 = arith.maximumf %13, %14 : vector<16x256xf32>
    %16 = arith.truncf %15 : vector<16x256xf32> to vector<16x256xbf16>
    %c0_12 = arith.constant 0 : index
    %c0_13 = arith.constant 0 : index
    %17 = vector.load %arg6[%c0_12, %c0_13] : memref<256x128xbf16, #tpu.memory_space<vmem>>, vector<256x128xbf16>
    %cst_14 = arith.constant dense<0.000000e+00> : vector<16x128xf32>
    %18 = tpu.matmul %16, %17, %cst_14 {dimension_numbers = #tpu.dot_dimension_numbers<[1], [0], [0], [1], [0, 0, 1, 1], [], []>} : vector<16x256xbf16>, vector<256x128xbf16>, vector<16x128xf32> -> vector<16x128xf32>
    %c0_15 = arith.constant 0 : index
    %c0_16 = arith.constant 0 : index
    %19 = vector.load %arg7[%c0_15, %c0_16] : memref<1x128xf32, #tpu.memory_space<vmem>>, vector<1x128xf32>
    %20 = vector.broadcast %19 : vector<1x128xf32> to vector<16x128xf32>
    %21 = arith.addf %18, %20 : vector<16x128xf32>
    %c0_17 = arith.constant 0 : index
    %c0_18 = arith.constant 0 : index
    %22 = vector.load %arg8[%c0_17, %c0_18] : memref<16x128xf32, #tpu.memory_space<vmem>>, vector<16x128xf32>
    tpu.vector_store %arg8[%c0_17, %c0_18], %21 {strides = array<i32>} : memref<16x128xf32, #tpu.memory_space<vmem>>, vector<16x128xf32>,
    return
  }
  func.func @transform_0(%arg0: i32) -> (i32, i32) {
    %c0_i32 = arith.constant 0 : i32
    %c0_i32_0 = arith.constant 0 : i32
    return %arg0, %c0_i32 : i32, i32
  }
  func.func @transform_1(%arg0: i32) -> (i32, i32) {
    %c0_i32 = arith.constant 0 : i32
    %c0_i32_0 = arith.constant 0 : i32
    %c0_i32_1 = arith.constant 0 : i32
    return %c0_i32, %c0_i32_0 : i32, i32
  }
  func.func @transform_2(%arg0: i32) -> (i32, i32) {
    %c0_i32 = arith.constant 0 : i32
    %c0_i32_0 = arith.constant 0 : i32
    %c0_i32_1 = arith.constant 0 : i32
    return %c0_i32, %c0_i32_0 : i32, i32
  }
  func.func @transform_3(%arg0: i32) -> (i32, i32) {
    %c0_i32 = arith.constant 0 : i32
    %c0_i32_0 = arith.constant 0 : i32
    %c0_i32_1 = arith.constant 0 : i32
    return %c0_i32, %c0_i32_0 : i32, i32
  }
  func.func @transform_4(%arg0: i32) -> (i32, i32) {
    %c0_i32 = arith.constant 0 : i32
    %c0_i32_0 = arith.constant 0 : i32
    %c0_i32_1 = arith.constant 0 : i32
    return %c0_i32, %c0_i32_0 : i32, i32
  }
  func.func @transform_5(%arg0: i32) -> (i32, i32) {
    %c0_i32 = arith.constant 0 : i32
    %c0_i32_0 = arith.constant 0 : i32
    %c0_i32_1 = arith.constant 0 : i32
    return %c0_i32, %c0_i32_0 : i32, i32
  }
  func.func @transform_6(%arg0: i32) -> (i32, i32) {
    %c0_i32 = arith.constant 0 : i32
    %c0_i32_0 = arith.constant 0 : i32
    %c0_i32_1 = arith.constant 0 : i32
    return %c0_i32, %c0_i32_0 : i32, i32
  }
  func.func @transform_7(%arg0: i32) -> (i32, i32) {
    %c0_i32 = arith.constant 0 : i32
    %c0_i32_0 = arith.constant 0 : i32
    return %arg0, %c0_i32 : i32, i32
  }
}

</mosaic_0001>

<bundles_post_ra>
// kernel: tpu_custom_call.1
= control target key start
LH: loop header
LB: loop body
LE: loop exit
PB: predicated region body
PF: predicated region fallthrough
CT: control target
= control target key end

     0   :  { %12 = vsyncpa [#allocation3], 0  ;;  %s1674_s0 = inlined_call_operand.hbm [shape: bf16[16,128], index: 0, kind: input, shape index: {}]   ;;  %s1675_s1 = inlined_call_operand.hbm [shape: bf16[128,512], index: 1, kind: input, shape index: {}]   ;;  %s1676_s2 = inlined_call_operand.vmem [shape: f32[1,512], index: 2, kind: input, shape index: {}]   ;;  %s1677_s3 = inlined_call_operand.hbm [shape: bf16[512,256], index: 3, kind: input, shape index: {}]   ;;  %s1678_s4 = inlined_call_operand.vmem [shape: f32[1,256], index: 4, kind: input, shape index: {}]   ;;  %s1679_s5 = inlined_call_operand.hbm [shape: bf16[256,128], index: 5, kind: input, shape index: {}]   ;;  %s1680_s6 = inlined_call_operand.vmem [shape: f32[1,128], index: 6, kind: input, shape index: {}]   ;;  %s1681_s7 = inlined_call_operand.hbm [shape: f32[16,128], index: 7, kind: output, shape index: {}]  }
   0x1   :  { %13 = vsyncpa [#allocation6], 0 }
   0x2   :  { %14 = vsyncpa [#allocation9], 0 }
   0x3   :  { %15 = vsyncpa [#allocation4], 0  ;;  %s1523_s24 = smov [#allocation5]   ;;  %s1405_s28 = scalar_lea.hbm %s1675_s1, 4096 }
   0x4   :  { %s33_s25 = sshll.u32 %s1523_s24, 4  ;;  %p1406_p0 = scmp.ne.s32.totalorder %s1675_s1, %s1405_s28  ;;  %s34_s25 = int_to_ptr.vmem [resolvable:$true] %s33_s25 }
   0x5   :  { %p1409_p1 = scmp.lt.u32.totalorder %s1405_s28, %s1675_s1 }
   0x7   :  { %p1411_p2 = pnand %p1409_p1, %p1406_p0 }
   0x9   :  { %1414 = shalt.err (!%p1411_p2)
}
   0xa   :  { %s1415_s10 = scalar_lea.vmem %s34_s25, 4096  ;;  %p1420_p4 = scmp.lt.s32.totalorder %s34_s25, %s34_s25 }
   0xb   :  { %p1416_p3 = scmp.ne.s32.totalorder %s34_s25, %s1415_s10  ;;  %p1421_p5 = scmp.lt.s32.totalorder %s1415_s10, %s1415_s10 }
   0xd   :  { %p1422_p6 = por %p1421_p5, %p1420_p4 }
   0xf   :  { %p1423_p7 = pnand %p1422_p6, %p1416_p3 }
  0x11   :  { %1426 = shalt.err (!%p1423_p7)
}
  0x12   :  { %s1524_s11 = smov 256   ;;  %s1525_s12 = smov 16  }
  0x13   :  { %39 = dma.hbm_to_vmem [thread:$0]  %s1675_s1, 4096, %s34_s25, [#allocation6], %s1524_s11, %s1524_s11, %s1525_s12  }
  0x14   :  { %s1526_s15 = smov [#allocation2]   ;;  %s1427_s19 = scalar_lea.hbm %s1674_s0, 128 }
  0x15   :  { %s21_s16 = sshll.u32 %s1526_s15, 4  ;;  %p1428_p8 = scmp.ne.s32.totalorder %s1674_s0, %s1427_s19  ;;  %s22_s16 = int_to_ptr.vmem [resolvable:$true] %s21_s16 }
  0x16   :  { %p1431_p9 = scmp.lt.u32.totalorder %s1427_s19, %s1674_s0 }
  0x18   :  { %p1433_p10 = pnand %p1431_p9, %p1428_p8 }
  0x1a   :  { %1436 = shalt.err (!%p1433_p10)
}
  0x1b   :  { %s1437_s24 = scalar_lea.vmem %s22_s16, 128  ;;  %p1442_p12 = scmp.lt.s32.totalorder %s22_s16, %s22_s16 }
  0x1c   :  { %p1438_p11 = scmp.ne.s32.totalorder %s22_s16, %s1437_s24  ;;  %p1443_p13 = scmp.lt.s32.totalorder %s1437_s24, %s1437_s24 }
  0x1e   :  { %p1444_p0 = por %p1443_p13, %p1442_p12 }
  0x20   :  { %p1445_p1 = pnand %p1444_p0, %p1438_p11 }
  0x22   :  { %1448 = shalt.err (!%p1445_p1)
}
  0x23   :  { %s1527_s1 = smov 64   ;;  %s1528_s25 = smov 4  }
  0x24   :  { %27 = dma.hbm_to_vmem [thread:$0]  %s1674_s0, 128, %s22_s16, [#allocation3], %s1527_s1, %s1527_s1, %s1528_s25  }
  0x25   :  { %s1529_s28 = smov [#allocation7]   ;;  %s1449_s9 = scalar_lea.hbm %s1677_s3, 8192 }
  0x26   :  { %s47_s29 = sshll.u32 %s1529_s28, 4  ;;  %p1450_p2 = scmp.ne.s32.totalorder %s1677_s3, %s1449_s9  ;;  %s48_s29 = int_to_ptr.vmem [resolvable:$true] %s47_s29 }
  0x27   :  { %p1453_p3 = scmp.lt.u32.totalorder %s1449_s9, %s1677_s3 }
  0x29   :  { %p1455_p4 = pnand %p1453_p3, %p1450_p2 }
  0x2b   :  { %1458 = shalt.err (!%p1455_p4)
}
  0x2c   :  { %s1459_s14 = scalar_lea.vmem %s48_s29, 8192  ;;  %p1464_p6 = scmp.lt.s32.totalorder %s48_s29, %s48_s29 }
  0x2d   :  { %p1460_p5 = scmp.ne.s32.totalorder %s48_s29, %s1459_s14  ;;  %p1465_p7 = scmp.lt.s32.totalorder %s1459_s14, %s1459_s14 }
  0x2f   :  { %p1466_p8 = por %p1465_p7, %p1464_p6 }
  0x31   :  { %p1467_p9 = pnand %p1466_p8, %p1460_p5 }
  0x33   :  { %1470 = shalt.err (!%p1467_p9)
}
  0x34   :  { %s1530_s0 = smov 128   ;;  %s1531_s15 = smov 8  }
  0x35   :  { %53 = dma.hbm_to_vmem [thread:$0]  %s1677_s3, 8192, %s48_s29, [#allocation6], %s1530_s0, %s1530_s0, %s1531_s15  }
  0x36   :  { %s1532_s18 = smov [#allocation8]   ;;  %s1471_s22 = scalar_lea.hbm %s1679_s5, 2048 }
  0x37   :  { %s61_s19 = sshll.u32 %s1532_s18, 4  ;;  %p1472_p10 = scmp.ne.s32.totalorder %s1679_s5, %s1471_s22  ;;  %s62_s19 = int_to_ptr.vmem [resolvable:$true] %s61_s19 }
  0x38   :  { %p1475_p11 = scmp.lt.u32.totalorder %s1471_s22, %s1679_s5 }
  0x3a   :  { %p1477_p12 = pnand %p1475_p11, %p1472_p10 }
  0x3c   :  { %1480 = shalt.err (!%p1477_p12)
}
  0x3d   :  { %s1481_s28 = scalar_lea.vmem %s62_s19, 2048  ;;  %p1486_p0 = scmp.lt.s32.totalorder %s62_s19, %s62_s19 }
  0x3e   :  { %p1482_p13 = scmp.ne.s32.totalorder %s62_s19, %s1481_s28  ;;  %p1487_p1 = scmp.lt.s32.totalorder %s1481_s28, %s1481_s28 }
  0x40   :  { %p1488_p2 = por %p1487_p1, %p1486_p0 }
  0x42   :  { %p1489_p3 = pnand %p1488_p2, %p1482_p13 }
  0x44   :  { %1492 = shalt.err (!%p1489_p3)
}
  0x45   :  { %67 = dma.hbm_to_vmem [thread:$0]  %s1679_s5, 2048, %s62_s19, [#allocation9], %s1527_s1, %s1527_s1, %s1528_s25  }
  0x46   :  { %1515 = dma.done.wait [#allocation3], 128  }
  0x47   :  { %1516 = vsyncadd [#allocation3], 4294967168 }
  0x48   :  { %1517 = dma.done.wait [#allocation6], 12288  }
  0x49   :  { %1518 = vsyncadd [#allocation6], 4294955008 }
  0x4a   :  { %1519 = dma.done.wait [#allocation9], 2048  }
  0x4b   :  { %1520 = vsyncadd [#allocation9], 4294965248  ;;  %v1533_v0 = vmov 0   ;;  %v1244_v1 = vld [vmem:[#allocation5 + $0x4] ss:$16 sps:$4 sm:$0xff]   ;;  %v1632_v23 = vld [vmem:[#allocation2] sm:$0xff]  }
  0x4c   :  { %337 = vmatprep.mubr.bf16.mxu1 %v1533_v0  ;;  %v1246_v2 = vld [vmem:[#allocation5] ss:$16 sps:$4 sm:$0xff]   ;;  %305 = vmatprep.subr.bf16.mxu1 %v1244_v1  ;;  %v1247_v3 = vld [vmem:[#allocation5 + $0x24] ss:$16 sps:$4 sm:$0xff]   ;;  %v1271_v22 = vld [vmem:[#allocation5 + $0xc] ss:$16 sps:$4 sm:$0xff]  }
  0x4d   :  { %306 = vmatpush1.bf16.msra.mxu1 %v1246_v2  ;;  %v1249_v4 = vld [vmem:[#allocation5 + $0x20] ss:$16 sps:$4 sm:$0xff]   ;;  %v1250_v5 = vld [vmem:[#allocation5 + $0x44] ss:$16 sps:$4 sm:$0xff]   ;;  %v1269_v25 = vld [vmem:[#allocation5 + $0x8] ss:$16 sps:$4 sm:$0xff]  }
  0x4e   :  { %307 = vmatprep.subr.bf16.mxu1 %v1247_v3  ;;  %v1252_v6 = vld [vmem:[#allocation5 + $0x40] ss:$16 sps:$4 sm:$0xff]   ;;  %v1253_v7 = vld [vmem:[#allocation5 + $0x64] ss:$16 sps:$4 sm:$0xff]   ;;  %v1274_v26 = vld [vmem:[#allocation5 + $0x2c] ss:$16 sps:$4 sm:$0xff]  }
  0x4f   :  { %v1255_v8 = vld [vmem:[#allocation5 + $0x60] ss:$16 sps:$4 sm:$0xff]   ;;  %v1256_v9 = vld [vmem:[#allocation5 + $0x84] ss:$16 sps:$4 sm:$0xff]   ;;  %v1272_v29 = vld [vmem:[#allocation5 + $0x28] ss:$16 sps:$4 sm:$0xff]  }
  0x50   :  { %v1258_v10 = vld [vmem:[#allocation5 + $0x80] ss:$16 sps:$4 sm:$0xff]   ;;  %v1259_v11 = vld [vmem:[#allocation5 + $0xa4] ss:$16 sps:$4 sm:$0xff]   ;;  %v1277_v31 = vld [vmem:[#allocation5 + $0x4c] ss:$16 sps:$4 sm:$0xff]  }
  0x51   :  { %308 = vmatpush1.bf16.msra.mxu1 %v1249_v4  ;;  %v1261_v12 = vld [vmem:[#allocation5 + $0xa0] ss:$16 sps:$4 sm:$0xff]   ;;  %v1262_v13 = vld [vmem:[#allocation5 + $0xc4] ss:$16 sps:$4 sm:$0xff]   ;;  %v1275_v33 = vld [vmem:[#allocation5 + $0x48] ss:$16 sps:$4 sm:$0xff]  }
  0x52   :  { %309 = vmatprep.subr.bf16.mxu1 %v1250_v5  ;;  %v1264_v14 = vld [vmem:[#allocation5 + $0xc0] ss:$16 sps:$4 sm:$0xff]   ;;  %v1293_v15 = vld [vmem:[#allocation7 + $0x4] ss:$8 sps:$4 sm:$0xff]   ;;  %v1296_v18 = vld [vmem:[#allocation7 + $0x14] ss:$8 sps:$4 sm:$0xff]  }
  0x53   :  { %v1295_v16 = vld [vmem:[#allocation7] ss:$8 sps:$4 sm:$0xff]   ;;  %v1265_v17 = vld [vmem:[#allocation5 + $0xe4] ss:$16 sps:$4 sm:$0xff]   ;;  %799 = vmatprep.subr.bf16.mxu0 %v1293_v15  ;;  %v1298_v19 = vld [vmem:[#allocation7 + $0x10] ss:$8 sps:$4 sm:$0xff]  }
  0x54   :  { %800 = vmatpush1.bf16.msra.mxu0 %v1295_v16  ;;  %v1267_v20 = vld [vmem:[#allocation5 + $0xe0] ss:$16 sps:$4 sm:$0xff]   ;;  %v1299_v21 = vld [vmem:[#allocation7 + $0x24] ss:$8 sps:$4 sm:$0xff]   ;;  %v1302_v27 = vld [vmem:[#allocation7 + $0x34] ss:$8 sps:$4 sm:$0xff]  }
  0x55   :  { %310 = vmatpush1.bf16.msra.mxu1 %v1252_v6  ;;  %801 = vmatprep.subr.bf16.mxu0 %v1296_v18  ;;  %v1301_v24 = vld [vmem:[#allocation7 + $0x20] ss:$8 sps:$4 sm:$0xff]   ;;  %v1304_v28 = vld [vmem:[#allocation7 + $0x30] ss:$8 sps:$4 sm:$0xff]   ;;  %v1305_v30 = vld [vmem:[#allocation7 + $0x44] ss:$8 sps:$4 sm:$0xff]  }
  0x56   :  { %311 = vmatprep.subr.bf16.mxu1 %v1253_v7  ;;  %v1307_v32 = vld [vmem:[#allocation7 + $0x40] ss:$8 sps:$4 sm:$0xff]   ;;  %v1308_v34 = vld [vmem:[#allocation7 + $0x54] ss:$8 sps:$4 sm:$0xff]   ;;  %v1310_v36 = vld [vmem:[#allocation7 + $0x50] ss:$8 sps:$4 sm:$0xff]  }
  0x57   :  { %v1280_v35 = vld [vmem:[#allocation5 + $0x6c] ss:$16 sps:$4 sm:$0xff]   ;;  %v1278_v37 = vld [vmem:[#allocation5 + $0x68] ss:$16 sps:$4 sm:$0xff]   ;;  %v1389_v3 = vld [vmem:[#allocation8 + $0x40] sm:$0xff]   ;;  %s1534_s8 = smov [#allocation10]  }
  0x58   :  { %802 = vmatpush1.bf16.msra.mxu0 %v1298_v19  ;;  %v1311_v38 = vld [vmem:[#allocation7 + $0x64] ss:$8 sps:$4 sm:$0xff]   ;;  %v1313_v40 = vld [vmem:[#allocation7 + $0x60] ss:$8 sps:$4 sm:$0xff]   ;;  %v1314_v42 = vld [vmem:[#allocation7 + $0x74] ss:$8 sps:$4 sm:$0xff]  }
  0x59   :  { %312 = vmatpush1.bf16.msra.mxu1 %v1255_v8  ;;  %803 = vmatprep.subr.bf16.mxu0 %v1299_v21  ;;  %v1283_v39 = vld [vmem:[#allocation5 + $0x8c] ss:$16 sps:$4 sm:$0xff]   ;;  %v1281_v41 = vld [vmem:[#allocation5 + $0x88] ss:$16 sps:$4 sm:$0xff]   ;;  %v1390_v4 = vld [vmem:[#allocation8] sm:$0xff]   ;;  %s1074_s9 = sshll.u32 %s1534_s8, 4  ;;  %s1075_s9 = int_to_ptr.vmem [resolvable:$true] %s1074_s9 }
  0x5a   :  { %313 = vmatprep.subr.bf16.mxu1 %v1256_v9  ;;  %v1286_v43 = vld [vmem:[#allocation5 + $0xac] ss:$16 sps:$4 sm:$0xff]   ;;  %v1316_v44 = vld [vmem:[#allocation7 + $0x70] ss:$8 sps:$4 sm:$0xff]   ;;  %v1319_v48 = vld [vmem:[#allocation7 + $0x80] ss:$8 sps:$4 sm:$0xff]   ;;  %p1498_p5 = scmp.lt.s32.totalorder %s1075_s9, %s1075_s9 }
  0x5b   :  { %v1284_v45 = vld [vmem:[#allocation5 + $0xa8] ss:$16 sps:$4 sm:$0xff]   ;;  %v1317_v46 = vld [vmem:[#allocation7 + $0x84] ss:$8 sps:$4 sm:$0xff]   ;;  %v1320_v50 = vld [vmem:[#allocation7 + $0x94] ss:$8 sps:$4 sm:$0xff]  }
  0x5c   :  { %804 = vmatpush1.bf16.msra.mxu0 %v1301_v24  ;;  %v1289_v47 = vld [vmem:[#allocation5 + $0xcc] ss:$16 sps:$4 sm:$0xff]   ;;  %v1287_v49 = vld [vmem:[#allocation5 + $0xc8] ss:$16 sps:$4 sm:$0xff]   ;;  %v1393_v7 = vld [vmem:[#allocation8 + $0x50] sm:$0xff]   ;;  %s1493_s10 = scalar_lea.vmem %s1075_s9, 256 }
  0x5d   :  { %314 = vmatpush1.bf16.msra.mxu1 %v1258_v10  ;;  %805 = vmatprep.subr.bf16.mxu0 %v1302_v27  ;;  %v1292_v51 = vld [vmem:[#allocation5 + $0xec] ss:$16 sps:$4 sm:$0xff]   ;;  %v1322_v52 = vld [vmem:[#allocation7 + $0x90] ss:$8 sps:$4 sm:$0xff]   ;;  %v1325_v55 = vld [vmem:[#allocation7 + $0xa0] ss:$8 sps:$4 sm:$0xff]   ;;  %p1494_p4 = scmp.ne.s32.totalorder %s1075_s9, %s1493_s10  ;;  %p1499_p6 = scmp.lt.s32.totalorder %s1493_s10, %s1493_s10 }
  0x5e   :  { %315 = vmatprep.subr.bf16.mxu1 %v1259_v11  ;;  %v1290_v53 = vld [vmem:[#allocation5 + $0xe8] ss:$16 sps:$4 sm:$0xff]   ;;  %v1323_v54 = vld [vmem:[#allocation7 + $0xa4] ss:$8 sps:$4 sm:$0xff]   ;;  %v1326_v56 = vld [vmem:[#allocation7 + $0xb4] ss:$8 sps:$4 sm:$0xff]  }
  0x5f   :  { %v1328_v57 = vld [vmem:[#allocation7 + $0xb0] ss:$8 sps:$4 sm:$0xff]   ;;  %v1329_v58 = vld [vmem:[#allocation7 + $0xc4] ss:$8 sps:$4 sm:$0xff]   ;;  %v1331_v59 = vld [vmem:[#allocation7 + $0xc0] ss:$8 sps:$4 sm:$0xff]   ;;  %p1500_p7 = por %p1499_p6, %p1498_p5 }
  0x60   :  { %806 = vmatpush1.bf16.msra.mxu0 %v1304_v28  ;;  %v1332_v60 = vld [vmem:[#allocation7 + $0xd4] ss:$8 sps:$4 sm:$0xff]   ;;  %v1334_v61 = vld [vmem:[#allocation7 + $0xd0] ss:$8 sps:$4 sm:$0xff]   ;;  %v1335_v62 = vld [vmem:[#allocation7 + $0xe4] ss:$8 sps:$4 sm:$0xff]  }
  0x61   :  { %316 = vmatpush1.bf16.msra.mxu1 %v1261_v12  ;;  %807 = vmatprep.subr.bf16.mxu0 %v1305_v30  ;;  %v1337_v63 = vld [vmem:[#allocation7 + $0xe0] ss:$8 sps:$4 sm:$0xff]   ;;  %v1340_v1 = vld [vmem:[#allocation7 + $0xf0] ss:$8 sps:$4 sm:$0xff]   ;;  %v1343_v2 = vld [vmem:[#allocation7 + $0x104] ss:$8 sps:$4 sm:$0xff]   ;;  %p1501_p8 = pnand %p1500_p7, %p1494_p4 }
  0x62   :  { %317 = vmatprep.subr.bf16.mxu1 %v1262_v13  ;;  %v1391_v5 = vld [vmem:[#allocation8 + $0x48] sm:$0xff]   ;;  %v1394_v8 = vld [vmem:[#allocation8 + $0x10] sm:$0xff]   ;;  %v1395_v9 = vld [vmem:[#allocation8 + $0x58] sm:$0xff]  }
  0x63   :  { %v1392_v6 = vld [vmem:[#allocation8 + $0x8] sm:$0xff]   ;;  %v1396_v10 = vld [vmem:[#allocation8 + $0x18] sm:$0xff]   ;;  %v1397_v11 = vld [vmem:[#allocation8 + $0x60] sm:$0xff]  }
  0x64   :  { %808 = vmatpush1.bf16.msra.mxu0 %v1307_v32  ;;  %v1398_v12 = vld [vmem:[#allocation8 + $0x20] sm:$0xff]   ;;  %v1399_v13 = vld [vmem:[#allocation8 + $0x68] sm:$0xff]  }
  0x65   :  { %318 = vmatpush1.bf16.msra.mxu1 %v1264_v14  ;;  %809 = vmatprep.subr.bf16.mxu0 %v1308_v34  ;;  %v119_v14 = vlaneseq }
  0x66   :  { %319 = vmatprep.subr.bf16.mxu1 %v1265_v17  ;;  %v117_v17 = vld [vmem:[%s1676_s2] sm:$0xf] }
  0x67   :  { %v1636_v15 = vshrl.u32 %v119_v14, 7  ;;  %v1382_v14 = vld [vmem:[#allocation7 + $0x1d4] ss:$8 sps:$4 sm:$0xff]  }
  0x68   :  { %810 = vmatpush1.bf16.msra.mxu0 %v1310_v36  ;;  %v1346_v36 = vld [vmem:[#allocation7 + $0x114] ss:$8 sps:$4 sm:$0xff]  }
  0x69   :  { %320 = vmatpush1.bf16.msra.mxu1 %v1267_v20  ;;  %811 = vmatprep.subr.bf16.mxu0 %v1311_v38  ;;  %v121_v16 = vsub.s32 0, %v1636_v15  ;;  %v125_v18 = vsub.s32 1, %v1636_v15  ;;  %v1349_v38 = vld [vmem:[#allocation7 + $0x124] ss:$8 sps:$4 sm:$0xff]  }
  0x6a   :  { %348 = vmatprep.subr.bf16.mxu1 %v1271_v22 }
  0x6b   :  { %v122_v19 = vrot.slane %v117_v17, %v121_v16  ;;  %v126_v20 = vrot.slane %v117_v17, %v125_v18 }
  0x6c   :  { %338 = vmatmul.mubr.bf16.vlgmr.msra.gmra.mrb[0].mxu1 %v1632_v23  ;;  %812 = vmatpush1.bf16.msra.mxu0 %v1313_v40  ;;  %v1352_v40 = vld [vmem:[#allocation7 + $0x134] ss:$8 sps:$4 sm:$0xff]  }
  0x6d   :  { %349 = vmatpush1.bf16.msra.mxu1 %v1269_v25  ;;  %380 = vmatprep.mubr.bf16.mxu1 %v1533_v0  ;;  %v1338_v0 = vld [vmem:[#allocation7 + $0xf4] ss:$8 sps:$4 sm:$0xff]  }
  0x6e   :  { %350 = vmatprep.subr.bf16.mxu1 %v1274_v26  ;;  %813 = vmatprep.subr.bf16.mxu0 %v1314_v42  ;;  %v1355_v42 = vld [vmem:[#allocation7 + $0x144] ss:$8 sps:$4 sm:$0xff]  }
  0x70   :  { %814 = vmatpush1.bf16.msra.mxu0 %v1316_v44  ;;  %v1358_v44 = vld [vmem:[#allocation7 + $0x154] ss:$8 sps:$4 sm:$0xff]  }
  0x71   :  { %351 = vmatpush1.bf16.msra.mxu1 %v1272_v29  ;;  %815 = vmatprep.subr.bf16.mxu0 %v1317_v46  ;;  %v133_v46 = vsub.s32 3, %v1636_v15 }
  0x72   :  { %352 = vmatprep.subr.bf16.mxu1 %v1277_v31 }
  0x74   :  { %816 = vmatpush1.bf16.msra.mxu0 %v1319_v48  ;;  %v1361_v48 = vld [vmem:[#allocation7 + $0x164] ss:$8 sps:$4 sm:$0xff]  }
  0x75   :  { %353 = vmatpush1.bf16.msra.mxu1 %v1275_v33  ;;  %817 = vmatprep.subr.bf16.mxu0 %v1320_v50  ;;  %v134_v50 = vrot.slane %v117_v17, %v133_v46 }
  0x76   :  { %354 = vmatprep.subr.bf16.mxu1 %v1280_v35  ;;  %v1341_v35 = vld [vmem:[#allocation7 + $0x100] ss:$8 sps:$4 sm:$0xff]  }
  0x78   :  { %818 = vmatpush1.bf16.msra.mxu0 %v1322_v52 }
  0x79   :  { %355 = vmatpush1.bf16.msra.mxu1 %v1278_v37  ;;  %819 = vmatprep.subr.bf16.mxu0 %v1323_v54  ;;  %v1344_v37 = vld [vmem:[#allocation7 + $0x110] ss:$8 sps:$4 sm:$0xff]  }
  0x7a   :  { %356 = vmatprep.subr.bf16.mxu1 %v1283_v39  ;;  %v1347_v39 = vld [vmem:[#allocation7 + $0x120] ss:$8 sps:$4 sm:$0xff]  }
  0x7c   :  { %820 = vmatpush1.bf16.msra.mxu0 %v1325_v55 }
  0x7d   :  { %357 = vmatpush1.bf16.msra.mxu1 %v1281_v41  ;;  %821 = vmatprep.subr.bf16.mxu0 %v1326_v56  ;;  %v1350_v41 = vld [vmem:[#allocation7 + $0x130] ss:$8 sps:$4 sm:$0xff]  }
  0x7e   :  { %358 = vmatprep.subr.bf16.mxu1 %v1286_v43  ;;  %v1353_v43 = vld [vmem:[#allocation7 + $0x140] ss:$8 sps:$4 sm:$0xff]  }
  0x80   :  { %822 = vmatpush1.bf16.msra.mxu0 %v1328_v57 }
  0x81   :  { %359 = vmatpush1.bf16.msra.mxu1 %v1284_v45  ;;  %823 = vmatprep.subr.bf16.mxu0 %v1329_v58  ;;  %v129_v45 = vsub.s32 2, %v1636_v15  ;;  %v1185_v15 = vld [vmem:[%s1680_s6] ss:$0 sm:$0xff] }
  0x82   :  { %360 = vmatprep.subr.bf16.mxu1 %v1289_v47  ;;  %v1356_v47 = vld [vmem:[#allocation7 + $0x150] ss:$8 sps:$4 sm:$0xff]  }
  0x84   :  { %824 = vmatpush1.bf16.msra.mxu0 %v1331_v59 }
  0x85   :  { %361 = vmatpush1.bf16.msra.mxu1 %v1287_v49  ;;  %825 = vmatprep.subr.bf16.mxu0 %v1332_v60  ;;  %v130_v49 = vrot.slane %v117_v17, %v129_v45  ;;  %v1380_v17 = vld [vmem:[#allocation7 + $0x1d0] ss:$8 sps:$4 sm:$0xff]  }
  0x86   :  { %362 = vmatprep.subr.bf16.mxu1 %v1292_v51  ;;  %v1359_v51 = vld [vmem:[#allocation7 + $0x160] ss:$8 sps:$4 sm:$0xff]  }
  0x88   :  { %826 = vmatpush1.bf16.msra.mxu0 %v1334_v61  ;;  %v1362_v61 = vld [vmem:[#allocation7 + $0x170] ss:$8 sps:$4 sm:$0xff]  }
  0x89   :  { %363 = vmatpush1.bf16.msra.mxu1 %v1290_v53  ;;  %827 = vmatprep.subr.bf16.mxu0 %v1335_v62  ;;  %v1364_v53 = vld [vmem:[#allocation7 + $0x174] ss:$8 sps:$4 sm:$0xff]  }
  0x8a   :  { %1202 = vmatprep.subr.bf16.mxu1 %v1389_v3 }
  0x8c   :  { %381 = vmatmul.mubr.bf16.vlgmr.msra.gmra.mrb[4].mxu1 %v1632_v23  ;;  %828 = vmatpush1.bf16.msra.mxu0 %v1337_v63 }
  0x8d   :  { %829 = vmatprep.subr.bf16.mxu0 %v1338_v0  ;;  %1203 = vmatpush3.bf16.msra.mxu1 %v1390_v4  ;;  %v1367_v0 = vld [vmem:[#allocation7 + $0x184] ss:$8 sps:$4 sm:$0xff]   ;;  %v1365_v4 = vld [vmem:[#allocation7 + $0x180] ss:$8 sps:$4 sm:$0xff]  }
  0x8e   :  { %1204 = vmatprep.subr.bf16.mxu1 %v1391_v5 }
  0x90   :  { %830 = vmatpush1.bf16.msra.mxu0 %v1340_v1 }
  0x91   :  { %842 = vmatprep.subr.bf16.mxu0 %v1343_v2  ;;  %1205 = vmatpush3.bf16.msra.mxu1 %v1392_v6  ;;  %v1370_v6 = vld [vmem:[#allocation7 + $0x194] ss:$8 sps:$4 sm:$0xff]  }
  0x92   :  { %1206 = vmatprep.subr.bf16.mxu1 %v1393_v7  ;;  %v1368_v7 = vld [vmem:[#allocation7 + $0x190] ss:$8 sps:$4 sm:$0xff]  }
  0x95   :  { %1207 = vmatpush3.bf16.msra.mxu1 %v1394_v8  ;;  %v1373_v8 = vld [vmem:[#allocation7 + $0x1a4] ss:$8 sps:$4 sm:$0xff]  }
  0x96   :  { %1208 = vmatprep.subr.bf16.mxu1 %v1395_v9  ;;  %v1371_v9 = vld [vmem:[#allocation7 + $0x1a0] ss:$8 sps:$4 sm:$0xff]  }
  0x99   :  { %1209 = vmatpush3.bf16.msra.mxu1 %v1396_v10  ;;  %v1376_v10 = vld [vmem:[#allocation7 + $0x1b4] ss:$8 sps:$4 sm:$0xff]  }
  0x9a   :  { %1210 = vmatprep.subr.bf16.mxu1 %v1397_v11  ;;  %v1374_v11 = vld [vmem:[#allocation7 + $0x1b0] ss:$8 sps:$4 sm:$0xff]  }
  0x9d   :  { %1211 = vmatpush3.bf16.msra.mxu1 %v1398_v12  ;;  %v1379_v12 = vld [vmem:[#allocation7 + $0x1c4] ss:$8 sps:$4 sm:$0xff]  }
  0x9e   :  { %1212 = vmatprep.subr.bf16.mxu1 %v1399_v13  ;;  %v1377_v13 = vld [vmem:[#allocation7 + $0x1c0] ss:$8 sps:$4 sm:$0xff]  }
 0x13f   :  { %v339_v21 = vpop.f32.mrb[0].mxu1 }
 0x140   :  { %v340_v22 = vadd.f32 %v339_v21, %v122_v19  ;;  %v341_v23 = vpop.f32.mrb[1].mxu1  ;;  %v1388_v21 = vld [vmem:[#allocation7 + $0x1f4] ss:$8 sps:$4 sm:$0xff]  }
 0x141   :  { %v342_v24 = vadd.f32 %v341_v23, %v126_v20  ;;  %v343_v25 = vpop.f32.mrb[2].mxu1  ;;  %v1400_v23 = vld [vmem:[#allocation8 + $0x28] sm:$0xff]  }
 0x142   :  { %v344_v26 = vadd.f32 %v343_v25, %v122_v19  ;;  %v345_v27 = vpop.f32.mrb[3].mxu1  ;;  %v391_v29 = vmax.f32 %v340_v22, 0.0  ;;  %v1385_v19 = vld [vmem:[#allocation7 + $0x1e4] ss:$8 sps:$4 sm:$0xff]   ;;  %v1386_v22 = vld [vmem:[#allocation7 + $0x1f0] ss:$8 sps:$4 sm:$0xff]   ;;  %1213 = vmatpush3.bf16.msra.mxu1 %v1400_v23 }
 0x143   :  { %v346_v28 = vadd.f32 %v345_v27, %v126_v20  ;;  %v392_v31 = vmax.f32 %v342_v24, 0.0  ;;  %v1383_v20 = vld [vmem:[#allocation7 + $0x1e0] ss:$8 sps:$4 sm:$0xff]   ;;  %v1401_v24 = vld [vmem:[#allocation8 + $0x70] sm:$0xff]   ;;  %v1404_v27 = vld [vmem:[#allocation8 + $0x38] sm:$0xff]  }
 0x144   :  { %v395_v30 = vmax.f32 %v344_v26, 0.0  ;;  %v1402_v25 = vld [vmem:[#allocation8 + $0x30] sm:$0xff]   ;;  %1214 = vmatprep.subr.bf16.mxu1 %v1401_v24  ;;  %v1403_v26 = vld [vmem:[#allocation8 + $0x78] sm:$0xff]  }
 0x145   :  { %v396_v32 = vmax.f32 %v346_v28, 0.0  ;;  %v467_v28 = vld [vmem:[%s1678_s4] sm:$0x3] }
 0x146   :  { %v399_v33 = vpack.c.bf16 %v395_v30, %v391_v29  ;;  %1215 = vmatpush3.bf16.msra.mxu1 %v1402_v25  ;;  %v472_v29 = vrot.slane %v467_v28, %v121_v16  ;;  %v476_v30 = vrot.slane %v467_v28, %v125_v18 }
 0x147   :  { %v400_v34 = vpack.c.bf16 %v396_v32, %v392_v31  ;;  %1216 = vmatprep.subr.bf16.mxu1 %v1403_v26 }
 0x149   :  { %831 = vmatprep.mubr.bf16.mxu0 %v400_v34 }
 0x14a   :  { %832 = vmatmul.mubr.bf16.vlgmr.msra.gmra.mrb[0].mxu0 %v399_v33  ;;  %1217 = vmatpush3.bf16.msra.mxu1 %v1404_v27 }
 0x14b   :  { %843 = vmatpush1.bf16.msra.mxu0 %v1341_v35 }
 0x14c   :  { %844 = vmatprep.subr.bf16.mxu0 %v1346_v36 }
 0x14f   :  { %845 = vmatpush1.bf16.msra.mxu0 %v1344_v37 }
 0x150   :  { %846 = vmatprep.subr.bf16.mxu0 %v1349_v38 }
 0x153   :  { %847 = vmatpush1.bf16.msra.mxu0 %v1347_v39 }
 0x154   :  { %848 = vmatprep.subr.bf16.mxu0 %v1352_v40 }
 0x157   :  { %849 = vmatpush1.bf16.msra.mxu0 %v1350_v41 }
 0x158   :  { %850 = vmatprep.subr.bf16.mxu0 %v1355_v42 }
 0x15b   :  { %851 = vmatpush1.bf16.msra.mxu0 %v1353_v43 }
 0x15c   :  { %852 = vmatprep.subr.bf16.mxu0 %v1358_v44 }
 0x15f   :  { %853 = vmatpush1.bf16.msra.mxu0 %v1356_v47  ;;  %v382_v52 = vpop.f32.mrb[4].mxu1 }
 0x160   :  { %854 = vmatprep.subr.bf16.mxu0 %v1361_v48  ;;  %v383_v54 = vadd.f32 %v382_v52, %v130_v49  ;;  %v384_v55 = vpop.f32.mrb[5].mxu1 }
 0x161   :  { %v385_v56 = vadd.f32 %v384_v55, %v134_v50  ;;  %v386_v57 = vpop.f32.mrb[6].mxu1 }
 0x162   :  { %v393_v58 = vmax.f32 %v383_v54, 0.0  ;;  %v387_v59 = vadd.f32 %v386_v57, %v130_v49  ;;  %v388_v60 = vpop.f32.mrb[7].mxu1 }
 0x163   :  { %855 = vmatpush1.bf16.msra.mxu0 %v1359_v51  ;;  %v394_v62 = vmax.f32 %v385_v56, 0.0  ;;  %v389_v63 = vadd.f32 %v388_v60, %v134_v50 }
 0x164   :  { %856 = vmatprep.subr.bf16.mxu0 %v1364_v53  ;;  %v397_v1 = vmax.f32 %v387_v59, 0.0 }
 0x165   :  { %v398_v2 = vmax.f32 %v389_v63, 0.0 }
 0x166   :  { %v401_v3 = vpack.c.bf16 %v397_v1, %v393_v58 }
 0x167   :  { %857 = vmatpush1.bf16.msra.mxu0 %v1362_v61  ;;  %v402_v5 = vpack.c.bf16 %v398_v2, %v394_v62 }
 0x168   :  { %858 = vmatprep.subr.bf16.mxu0 %v1367_v0 }
 0x169   :  { %874 = vmatprep.mubr.bf16.mxu0 %v402_v5 }
 0x16b   :  { %859 = vmatpush1.bf16.msra.mxu0 %v1365_v4 }
 0x16c   :  { %860 = vmatprep.subr.bf16.mxu0 %v1370_v6 }
 0x16f   :  { %861 = vmatpush1.bf16.msra.mxu0 %v1368_v7 }
 0x170   :  { %862 = vmatprep.subr.bf16.mxu0 %v1373_v8 }
 0x173   :  { %863 = vmatpush1.bf16.msra.mxu0 %v1371_v9 }
 0x174   :  { %864 = vmatprep.subr.bf16.mxu0 %v1376_v10 }
 0x177   :  { %865 = vmatpush1.bf16.msra.mxu0 %v1374_v11 }
 0x178   :  { %866 = vmatprep.subr.bf16.mxu0 %v1379_v12 }
 0x17b   :  { %867 = vmatpush1.bf16.msra.mxu0 %v1377_v13 }
 0x17c   :  { %868 = vmatprep.subr.bf16.mxu0 %v1382_v14 }
 0x17f   :  { %869 = vmatpush1.bf16.msra.mxu0 %v1380_v17 }
 0x180   :  { %870 = vmatprep.subr.bf16.mxu0 %v1385_v19 }
 0x183   :  { %871 = vmatpush1.bf16.msra.mxu0 %v1383_v20 }
 0x184   :  { %872 = vmatprep.subr.bf16.mxu0 %v1388_v21 }
 0x187   :  { %873 = vmatpush1.bf16.msra.mxu0 %v1386_v22 }
 0x18a   :  { %875 = vmatmul.mubr.bf16.vlgmr.msra.gmra.mrb[0].mxu0 %v401_v3 }
 0x25d   :  { %v876_v31 = vpop.f32.mrb[0].mxu0 }
 0x25e   :  { %v1224_v32 = vadd.f32 %v876_v31, %v472_v29  ;;  %v878_v33 = vpop.f32.mrb[1].mxu0 }
 0x25f   :  { %v1225_v34 = vadd.f32 %v878_v33, %v476_v30  ;;  %v880_v35 = vpop.f32.mrb[2].mxu0 }
 0x260   :  { %v1226_v36 = vadd.f32 %v880_v35, %v472_v29  ;;  %v882_v37 = vpop.f32.mrb[3].mxu0  ;;  %v885_v39 = vmax.f32 %v1224_v32, 0.0 }
 0x261   :  { %v1227_v38 = vadd.f32 %v882_v37, %v476_v30  ;;  %v886_v41 = vmax.f32 %v1225_v34, 0.0 }
 0x262   :  { %v887_v40 = vmax.f32 %v1226_v36, 0.0 }
 0x263   :  { %v888_v42 = vmax.f32 %v1227_v38, 0.0 }
 0x264   :  { %v889_v43 = vpack.c.bf16 %v887_v40, %v885_v39 }
 0x265   :  { %v890_v44 = vpack.c.bf16 %v888_v42, %v886_v41 }
 0x267   :  { %1058 = vmatprep.mubr.bf16.mxu1 %v890_v44 }
 0x268   :  { %1059 = vmatmul.mubr.bf16.vlgmr.msra.gmra.mrb[8].mxu1 %v889_v43 }
 0x33b   :  { %v1218_v16 = vpop.f32.mrb[8].mxu1 }
 0x33c   :  { %v1219_v18 = vpop.f32.mrb[9].mxu1 }
 0x33d   :  { %v1220_v45 = vadd.f32 %v1219_v18, %v1218_v16  ;;  %v1221_v46 = vpop.f32.mrb[10].mxu1 }
 0x33e   :  { %v1222_v47 = vpop.f32.mrb[11].mxu1 }
 0x33f   :  { %v1061_v48 = vadd.f32 %v1220_v45, %v1185_v15  ;;  %v1223_v49 = vadd.f32 %v1222_v47, %v1221_v46 }
 0x341   :  { %1067 = vst [vmem:[#allocation10] sm:$0xff] %v1061_v48  ;;  %v1064_v50 = vadd.f32 %v1223_v49, %v1185_v15 }
 0x343   :  { %1068 = vst [vmem:[#allocation10 + $0x8] sm:$0xff] %v1064_v50 }
 0x344   :  { %1504 = shalt.err (!%p1501_p8)
}
 0x345   :  { %s1505_s12 = scalar_lea.hbm %s1681_s7, 256 }
 0x346   :  { %p1506_p9 = scmp.ne.s32.totalorder %s1681_s7, %s1505_s12  ;;  %p1509_p10 = scmp.lt.u32.totalorder %s1505_s12, %s1681_s7 }
 0x348   :  { %p1511_p11 = pnand %p1509_p10, %p1506_p9 }
 0x34a   :  { %1514 = shalt.err (!%p1511_p11)
}
 0x34b   :  { %1080 = dma.vmem_to_hbm [thread:$0]  %s1075_s9, 256, %s1681_s7, [#allocation4], %s1530_s0, %s1530_s0, %s1531_s15  }
 0x34c   :  { %1521 = dma.done.wait [#allocation4], 256  }
 0x34d   :  { %1522 = vsyncadd [#allocation4], 4294967040 }
 0x34e   :  { %1084 = vsyncpa [#allocation3], 1 }
 0x34f   :  { %1085 = vsyncpa [#allocation6], 1 }
 0x350   :  { %1086 = vsyncpa [#allocation9], 1 }
 0x351   :  { %1087 = vsyncpa [#allocation4], 1 }

</bundles_post_ra>
